<compile_context>
chip_gen: v6e
topology: v6e:2x2x1
jax: 0.10.0
libtpu: 0.0.40
codegen_flags: <defaults>
</compile_context>

<pallas_src>
import functools

import jax
import jax.numpy as jnp
from jax.experimental import pallas as pl
from jax.experimental.pallas import tpu as pltpu


# --------------------------------------------------------------------------- #
# Resident single-pass kernel: everything lives in VMEM for one grid step.
# --------------------------------------------------------------------------- #
def _resident_kernel(wf_ref, wb_ref, x_ref, meas_ref, mask_ref, out_ref, *, n_batch):
    # Phase 1: forward model + global (whole-batch) sum of squared masked residual.
    ssq = jnp.float32(0.0)
    for n in range(n_batch):                     # n_batch is static; small by gating
        out_n = jnp.dot(wf_ref[...], x_ref[n], preferred_element_type=jnp.float32)
        out_ref[n] = out_n                       # out_ref doubles as the temp buffer
        d = (meas_ref[n] - out_n) * mask_ref[n]
        ssq = ssq + jnp.sum(d * d)
    # EUP rsqrt; eps guards the norm==0 singularity (torch autograd is NaN there).
    coef = jax.lax.rsqrt(jnp.maximum(ssq, jnp.float32(1e-20)))
    wb = coef * wb_ref[...]                      # fold 1/norm into the tiny (C,C) weight
    # Phase 2: out - scale * d(norm)/dx == out + wb @ (mask^2 * (meas - out)).
    for n in range(n_batch):
        out_n = out_ref[n]
        m = mask_ref[n]
        g = (meas_ref[n] - out_n) * (m * m)
        out_ref[n] = out_n + jnp.dot(wb, g, preferred_element_type=jnp.float32)


# --------------------------------------------------------------------------- #
# Streaming pass 1: accumulate per-image sum of squares in a resident output.
# --------------------------------------------------------------------------- #
def _sumsq_kernel(w_ref, x_ref, meas_ref, mask_ref, psum_ref):
    @pl.when(pl.program_id(1) == 0)
    def _():
        psum_ref[...] = jnp.zeros_like(psum_ref)
    out = jnp.dot(w_ref[...], x_ref[...], preferred_element_type=jnp.float32)
    diff = (meas_ref[...] - out) * mask_ref[...]
    # lane-axis reduce only; the (C,1) accumulator stays resident across tiles
    # and is written to HBM once per image.
    psum_ref[...] += jnp.sum(diff * diff, axis=1, keepdims=True)


# --------------------------------------------------------------------------- #
# Streaming pass 2: out + (1/norm) * w_bwd @ (mask^2 * (measurement - out))
#   w_bwd = scale * s * W^T folded on host; 1/norm from the SMEM scalar sums.
# --------------------------------------------------------------------------- #
def _update_kernel(ssq_ref, wf_ref, wb_ref, x_ref, meas_ref, mask_ref, out_ref,
                   *, n_partials):
    total = ssq_ref[0]
    for i in range(1, n_partials):               # static, tiny scalar loop (SMEM reads)
        total = total + ssq_ref[i]
    coef = jax.lax.rsqrt(jnp.maximum(total, jnp.float32(1e-20)))
    wb = coef * wb_ref[...]                      # scale the tiny (C,C), not the tile
    out = jnp.dot(wf_ref[...], x_ref[...], preferred_element_type=jnp.float32)
    m = mask_ref[...]
    # mask^2 form = exact autograd gradient for real-valued masks.
    g = (meas_ref[...] - out) * (m * m)
    out_ref[...] = out + jnp.dot(wb, g, preferred_element_type=jnp.float32)


def _round_up(v, m):
    return (v + m - 1) // m * m


def _pick_tile(hw, c, n, *, max_tile=32768, tile_budget_bytes=16 * 1024 * 1024):
    """Largest multiple of 128 dividing hw, capped so ~4 streams x 2 bufs fit VMEM."""
    # 4 tile streams (x, meas, mask, out) x 2 pipeline buffers x c*tP*4 bytes.
    cap = max(128, (tile_budget_bytes // (32 * c)) // 128 * 128)
    cap = min(cap, max_tile, hw)
    best = 128
    cand = 128
    while cand <= cap:
        if hw % cand == 0:
            best = cand
        cand += 128
    # v7x has 2 TensorCores: keep >=2 grid steps when the batch axis is 1.
    if n == 1 and best == hw and hw % 256 == 0:
        best = hw // 2
    return best


def posterior_sampling(x, sigma, w, measurement, mask, scale, *, force_two_pass=False):
    """x, measurement, mask: NCHW; sigma, scale: scalars; w: (C, C) model weight."""
    N, C, H, W_ = x.shape
    HW = H * W_
    HWp = _round_up(HW, 128)        # keep every store lane-dense (unmasked vst)

    def prep(a):
        a3 = a.reshape(N, C, HW)    # contiguous reshape only, no transpose
        if HWp != HW:
            # zero pad: mask==0 there -> contributes nothing to norm or gradient
            a3 = jnp.pad(a3, ((0, 0), (0, 0), (0, HWp - HW)))
        return a3

    x3, m3, k3 = prep(x), prep(measurement), prep(mask)

    sigma = jnp.asarray(sigma, jnp.float32)
    scale = jnp.asarray(scale, jnp.float32)
    s = jax.lax.rsqrt(sigma * sigma + 1.0)
    w = w.astype(jnp.float32)
    w_fwd = s * w                   # fold 1/sqrt(sigma^2+1) into the forward weight
    w_bwd = (scale * s) * w.T       # fold scale & sigma-scale; 1/norm applied in-kernel

    vmem_limit = 32 * 1024 * 1024   # safe on v5e/v6e (128 MiB) and v7x (64 MiB)

    bytes_per_array = N * C * HWp * 4
    resident_ok = (not force_two_pass) and bytes_per_array <= 2 * 1024 * 1024

    if resident_ok:
        # ---- single pass: 3 HBM reads + 1 write, one dispatch ---------------
        full = pl.BlockSpec((N, C, HWp), lambda i: (0, 0, 0))
        wsp = pl.BlockSpec((C, C), lambda i: (0, 0))
        out3 = pl.pallas_call(
            functools.partial(_resident_kernel, n_batch=N),
            out_shape=jax.ShapeDtypeStruct((N, C, HWp), jnp.float32),
            grid=(1,),
            in_specs=[wsp, wsp, full, full, full],
            out_specs=full,
            compiler_params=pltpu.CompilerParams(
                dimension_semantics=("arbitrary",),
                vmem_limit_bytes=vmem_limit,
            ),
        )(w_fwd, w_bwd, x3, m3, k3)
    else:
        # ---- streaming two-pass path -----------------------------------------
        tP = _pick_tile(HWp, C, N)
        n_tiles = HWp // tP
        tile = pl.BlockSpec((None, C, tP), lambda n, p: (n, 0, p))
        wsp = pl.BlockSpec((C, C), lambda n, p: (0, 0))

        # pass 1: per-image sum of squares, accumulated in a resident (C,1) block
        partials = pl.pallas_call(
            _sumsq_kernel,
            out_shape=jax.ShapeDtypeStruct((N, C, 1), jnp.float32),
            grid=(N, n_tiles),
            in_specs=[wsp, tile, tile, tile],
            out_specs=pl.BlockSpec((None, C, 1), lambda n, p: (n, 0, 0)),
            compiler_params=pltpu.CompilerParams(
                dimension_semantics=("parallel", "arbitrary"),
                vmem_limit_bytes=vmem_limit,
            ),
        )(w_fwd, x3, m3, k3)

        ssq_vec = partials.reshape(N * C)   # free reshape; read from SMEM in pass 2
        smem_spec = pl.BlockSpec(memory_space=pltpu.MemorySpace.SMEM)

        # pass 2: out + (1/norm) * w_bwd @ (mask^2 * (meas - out))
        out3 = pl.pallas_call(
            functools.partial(_update_kernel, n_partials=N * C),
            out_shape=jax.ShapeDtypeStruct((N, C, HWp), jnp.float32),
            grid=(N, n_tiles),
            in_specs=[smem_spec, wsp, wsp, tile, tile, tile],
            out_specs=tile,
            compiler_params=pltpu.CompilerParams(
                dimension_semantics=("parallel", "parallel"),
                vmem_limit_bytes=vmem_limit,
            ),
        )(ssq_vec, w_fwd, w_bwd, x3, m3, k3)

    if HWp != HW:
        out3 = out3[:, :, :HW]
    return out3.reshape(N, C, H, W_)


# ---------------- pure-JAX reference (uses jax.grad, mirrors torch.autograd) --
def _model_ref(x, w, sigma):
    s = 1.0 / jnp.sqrt(sigma * sigma + 1.0)
    return s * jnp.einsum("ck,nkhw->nchw", w, x)


def _reference(x, sigma, w, measurement, mask, scale):
    def norm_fn(xt):
        out = _model_ref(xt, w, sigma)
        d = (measurement - out) * mask
        return jnp.sqrt(jnp.sum(d * d))

    out = _model_ref(x, w, sigma)
    norm_grad = jax.grad(norm_fn)(x)
    return out - scale * norm_grad


if __name__ == "__main__":
    key = jax.random.PRNGKey(0)
    k1, k2, k3, k4 = jax.random.split(key, 4)

    N, C, H, W_ = 2, 4, 16, 16
    x = jax.random.normal(k1, (N, C, H, W_), jnp.float32)
    measurement = jax.random.normal(k2, (N, C, H, W_), jnp.float32)
    mask = (jax.random.uniform(k3, (N, C, H, W_)) > 0.5).astype(jnp.float32)
    w = jax.random.normal(k4, (C, C), jnp.float32) / jnp.sqrt(C)
    sigma = 0.7
    scale = 0.3

    ref = _reference(x, jnp.float32(sigma), w, measurement, mask, jnp.float32(scale))

    # Resident single-pass path (the one actually taken at this latent size).
    fn_res = jax.jit(functools.partial(posterior_sampling, sigma=sigma, scale=scale))
    out_res = jax.block_until_ready(fn_res(x, w=w, measurement=measurement, mask=mask))
    assert out_res.shape == (N, C, H, W_)
    assert jnp.allclose(out_res, ref, rtol=1e-4, atol=1e-4), float(
        jnp.max(jnp.abs(out_res - ref)))

    # Streaming two-pass path (used for large latents); exercised here for coverage.
    fn_2p = jax.jit(functools.partial(posterior_sampling, sigma=sigma, scale=scale,
                                      force_two_pass=True))
    out_2p = jax.block_until_ready(fn_2p(x, w=w, measurement=measurement, mask=mask))
    assert jnp.allclose(out_2p, ref, rtol=1e-4, atol=1e-4), float(
        jnp.max(jnp.abs(out_2p - ref)))

    print("KERNEL_OK")
</pallas_src>

<mosaic_0001>
module attributes {stable_mosaic.version = 11 : i64} {
  func.func @_resident_kernel(%arg0: i32, %arg1: memref<4x4xf32, #tpu.memory_space<vmem>>, %arg2: memref<4x4xf32, #tpu.memory_space<vmem>>, %arg3: memref<2x4x256xf32, #tpu.memory_space<vmem>>, %arg4: memref<2x4x256xf32, #tpu.memory_space<vmem>>, %arg5: memref<2x4x256xf32, #tpu.memory_space<vmem>>, %arg6: memref<2x4x256xf32, #tpu.memory_space<vmem>>) attributes {dimension_semantics = [#tpu.dimension_semantics<arbitrary>], iteration_bounds = array<i64: 1>, scalar_prefetch = 0 : i64, scratch_operands = 0 : i64, tpu.core_type = #tpu.core_type<tc>, window_params = [{pipeline_mode = #tpu.pipeline_mode<synchronous>, transform_indices = @transform_0, window_bounds = array<i64: 4, 4>}, {pipeline_mode = #tpu.pipeline_mode<synchronous>, transform_indices = @transform_1, window_bounds = array<i64: 4, 4>}, {pipeline_mode = #tpu.pipeline_mode<synchronous>, transform_indices = @transform_2, window_bounds = array<i64: 2, 4, 256>}, {pipeline_mode = #tpu.pipeline_mode<synchronous>, transform_indices = @transform_3, window_bounds = array<i64: 2, 4, 256>}, {pipeline_mode = #tpu.pipeline_mode<synchronous>, transform_indices = @transform_4, window_bounds = array<i64: 2, 4, 256>}, {pipeline_mode = #tpu.pipeline_mode<synchronous>, transform_indices = @transform_5, window_bounds = array<i64: 2, 4, 256>}]} {
    %c0 = arith.constant 0 : index
    %c0_0 = arith.constant 0 : index
    %0 = vector.load %arg1[%c0, %c0_0] : memref<4x4xf32, #tpu.memory_space<vmem>>, vector<4x4xf32>
    %c0_1 = arith.constant 0 : index
    %c0_2 = arith.constant 0 : index
    %c0_3 = arith.constant 0 : index
    %1 = vector.load %arg3[%c0_1, %c0_2, %c0_3] : memref<2x4x256xf32, #tpu.memory_space<vmem>>, vector<1x4x256xf32>
    %2 = vector.shape_cast %1 : vector<1x4x256xf32> to vector<4x256xf32>
    %cst = arith.constant dense<0.000000e+00> : vector<4x256xf32>
    %3 = tpu.matmul %0, %2, %cst {dimension_numbers = #tpu.dot_dimension_numbers<[1], [0], [0], [1], [0, 0, 1, 1], [], []>} : vector<4x4xf32>, vector<4x256xf32>, vector<4x256xf32> -> vector<4x256xf32>
    %c0_4 = arith.constant 0 : index
    %c0_5 = arith.constant 0 : index
    %c0_6 = arith.constant 0 : index
    %4 = vector.load %arg6[%c0_4, %c0_5, %c0_6] : memref<2x4x256xf32, #tpu.memory_space<vmem>>, vector<1x4x256xf32>
    %5 = vector.shape_cast %4 : vector<1x4x256xf32> to vector<4x256xf32>
    %6 = vector.shape_cast %3 : vector<4x256xf32> to vector<1x4x256xf32>
    tpu.vector_store %arg6[%c0_4, %c0_5, %c0_6], %6 {strides = array<i32>} : memref<2x4x256xf32, #tpu.memory_space<vmem>>, vector<1x4x256xf32>,
    %c0_7 = arith.constant 0 : index
    %c0_8 = arith.constant 0 : index
    %c0_9 = arith.constant 0 : index
    %7 = vector.load %arg4[%c0_7, %c0_8, %c0_9] : memref<2x4x256xf32, #tpu.memory_space<vmem>>, vector<1x4x256xf32>
    %8 = vector.shape_cast %7 : vector<1x4x256xf32> to vector<4x256xf32>
    %9 = arith.subf %8, %3 : vector<4x256xf32>
    %c0_10 = arith.constant 0 : index
    %c0_11 = arith.constant 0 : index
    %c0_12 = arith.constant 0 : index
    %10 = vector.load %arg5[%c0_10, %c0_11, %c0_12] : memref<2x4x256xf32, #tpu.memory_space<vmem>>, vector<1x4x256xf32>
    %11 = vector.shape_cast %10 : vector<1x4x256xf32> to vector<4x256xf32>
    %12 = arith.mulf %9, %11 : vector<4x256xf32>
    %13 = arith.mulf %12, %12 : vector<4x256xf32>
    %14 = vector.shape_cast %13 : vector<4x256xf32> to vector<1x4x256xf32>
    %cst_13 = arith.constant dense<0.000000e+00> : vector<1xf32>
    %15 = vector.multi_reduction <add>, %14, %cst_13 [1, 2] : vector<1x4x256xf32> to vector<1xf32>
    %16 = vector.shape_cast %15 : vector<1xf32> to vector<1x1x1xf32>
    %17 = vector.extract %16[0, 0, 0] : f32 from vector<1x1x1xf32>
    %cst_14 = arith.constant 0.000000e+00 : f32
    %18 = arith.addf %cst_14, %17 : f32
    %c0_15 = arith.constant 0 : index
    %c0_16 = arith.constant 0 : index
    %19 = vector.load %arg1[%c0_15, %c0_16] : memref<4x4xf32, #tpu.memory_space<vmem>>, vector<4x4xf32>
    %c1 = arith.constant 1 : index
    %c0_17 = arith.constant 0 : index
    %c0_18 = arith.constant 0 : index
    %20 = vector.load %arg3[%c1, %c0_17, %c0_18] : memref<2x4x256xf32, #tpu.memory_space<vmem>>, vector<1x4x256xf32>
    %21 = vector.shape_cast %20 : vector<1x4x256xf32> to vector<4x256xf32>
    %cst_19 = arith.constant dense<0.000000e+00> : vector<4x256xf32>
    %22 = tpu.matmul %19, %21, %cst_19 {dimension_numbers = #tpu.dot_dimension_numbers<[1], [0], [0], [1], [0, 0, 1, 1], [], []>} : vector<4x4xf32>, vector<4x256xf32>, vector<4x256xf32> -> vector<4x256xf32>
    %c1_20 = arith.constant 1 : index
    %c0_21 = arith.constant 0 : index
    %c0_22 = arith.constant 0 : index
    %23 = vector.load %arg6[%c1_20, %c0_21, %c0_22] : memref<2x4x256xf32, #tpu.memory_space<vmem>>, vector<1x4x256xf32>
    %24 = vector.shape_cast %23 : vector<1x4x256xf32> to vector<4x256xf32>
    %25 = vector.shape_cast %22 : vector<4x256xf32> to vector<1x4x256xf32>
    tpu.vector_store %arg6[%c1_20, %c0_21, %c0_22], %25 {strides = array<i32>} : memref<2x4x256xf32, #tpu.memory_space<vmem>>, vector<1x4x256xf32>,
    %c1_23 = arith.constant 1 : index
    %c0_24 = arith.constant 0 : index
    %c0_25 = arith.constant 0 : index
    %26 = vector.load %arg4[%c1_23, %c0_24, %c0_25] : memref<2x4x256xf32, #tpu.memory_space<vmem>>, vector<1x4x256xf32>
    %27 = vector.shape_cast %26 : vector<1x4x256xf32> to vector<4x256xf32>
    %28 = arith.subf %27, %22 : vector<4x256xf32>
    %c1_26 = arith.constant 1 : index
    %c0_27 = arith.constant 0 : index
    %c0_28 = arith.constant 0 : index
    %29 = vector.load %arg5[%c1_26, %c0_27, %c0_28] : memref<2x4x256xf32, #tpu.memory_space<vmem>>, vector<1x4x256xf32>
    %30 = vector.shape_cast %29 : vector<1x4x256xf32> to vector<4x256xf32>
    %31 = arith.mulf %28, %30 : vector<4x256xf32>
    %32 = arith.mulf %31, %31 : vector<4x256xf32>
    %33 = vector.shape_cast %32 : vector<4x256xf32> to vector<1x4x256xf32>
    %cst_29 = arith.constant dense<0.000000e+00> : vector<1xf32>
    %34 = vector.multi_reduction <add>, %33, %cst_29 [1, 2] : vector<1x4x256xf32> to vector<1xf32>
    %35 = vector.shape_cast %34 : vector<1xf32> to vector<1x1x1xf32>
    %36 = vector.extract %35[0, 0, 0] : f32 from vector<1x1x1xf32>
    %37 = arith.addf %18, %36 : f32
    %cst_30 = arith.constant 9.99999968E-21 : f32
    %38 = arith.maximumf %37, %cst_30 : f32
    %39 = math.rsqrt %38 : f32
    %c0_31 = arith.constant 0 : index
    %c0_32 = arith.constant 0 : index
    %40 = vector.load %arg2[%c0_31, %c0_32] : memref<4x4xf32, #tpu.memory_space<vmem>>, vector<4x4xf32>
    %41 = vector.broadcast %39 : f32 to vector<4x4xf32>
    %42 = arith.mulf %41, %40 : vector<4x4xf32>
    %c0_33 = arith.constant 0 : index
    %c0_34 = arith.constant 0 : index
    %c0_35 = arith.constant 0 : index
    %43 = vector.load %arg6[%c0_33, %c0_34, %c0_35] : memref<2x4x256xf32, #tpu.memory_space<vmem>>, vector<1x4x256xf32>
    %44 = vector.shape_cast %43 : vector<1x4x256xf32> to vector<4x256xf32>
    %c0_36 = arith.constant 0 : index
    %c0_37 = arith.constant 0 : index
    %c0_38 = arith.constant 0 : index
    %45 = vector.load %arg5[%c0_36, %c0_37, %c0_38] : memref<2x4x256xf32, #tpu.memory_space<vmem>>, vector<1x4x256xf32>
    %46 = vector.shape_cast %45 : vector<1x4x256xf32> to vector<4x256xf32>
    %c0_39 = arith.constant 0 : index
    %c0_40 = arith.constant 0 : index
    %c0_41 = arith.constant 0 : index
    %47 = vector.load %arg4[%c0_39, %c0_40, %c0_41] : memref<2x4x256xf32, #tpu.memory_space<vmem>>, vector<1x4x256xf32>
    %48 = vector.shape_cast %47 : vector<1x4x256xf32> to vector<4x256xf32>
    %49 = arith.subf %48, %44 : vector<4x256xf32>
    %50 = arith.mulf %46, %46 : vector<4x256xf32>
    %51 = arith.mulf %49, %50 : vector<4x256xf32>
    %cst_42 = arith.constant dense<0.000000e+00> : vector<4x256xf32>
    %52 = tpu.matmul %42, %51, %cst_42 {dimension_numbers = #tpu.dot_dimension_numbers<[1], [0], [0], [1], [0, 0, 1, 1], [], []>} : vector<4x4xf32>, vector<4x256xf32>, vector<4x256xf32> -> vector<4x256xf32>
    %53 = arith.addf %44, %52 : vector<4x256xf32>
    %c0_43 = arith.constant 0 : index
    %c0_44 = arith.constant 0 : index
    %c0_45 = arith.constant 0 : index
    %54 = vector.load %arg6[%c0_43, %c0_44, %c0_45] : memref<2x4x256xf32, #tpu.memory_space<vmem>>, vector<1x4x256xf32>
    %55 = vector.shape_cast %54 : vector<1x4x256xf32> to vector<4x256xf32>
    %56 = vector.shape_cast %53 : vector<4x256xf32> to vector<1x4x256xf32>
    tpu.vector_store %arg6[%c0_43, %c0_44, %c0_45], %56 {strides = array<i32>} : memref<2x4x256xf32, #tpu.memory_space<vmem>>, vector<1x4x256xf32>,
    %c1_46 = arith.constant 1 : index
    %c0_47 = arith.constant 0 : index
    %c0_48 = arith.constant 0 : index
    %57 = vector.load %arg6[%c1_46, %c0_47, %c0_48] : memref<2x4x256xf32, #tpu.memory_space<vmem>>, vector<1x4x256xf32>
    %58 = vector.shape_cast %57 : vector<1x4x256xf32> to vector<4x256xf32>
    %c1_49 = arith.constant 1 : index
    %c0_50 = arith.constant 0 : index
    %c0_51 = arith.constant 0 : index
    %59 = vector.load %arg5[%c1_49, %c0_50, %c0_51] : memref<2x4x256xf32, #tpu.memory_space<vmem>>, vector<1x4x256xf32>
    %60 = vector.shape_cast %59 : vector<1x4x256xf32> to vector<4x256xf32>
    %c1_52 = arith.constant 1 : index
    %c0_53 = arith.constant 0 : index
    %c0_54 = arith.constant 0 : index
    %61 = vector.load %arg4[%c1_52, %c0_53, %c0_54] : memref<2x4x256xf32, #tpu.memory_space<vmem>>, vector<1x4x256xf32>
    %62 = vector.shape_cast %61 : vector<1x4x256xf32> to vector<4x256xf32>
    %63 = arith.subf %62, %58 : vector<4x256xf32>
    %64 = arith.mulf %60, %60 : vector<4x256xf32>
    %65 = arith.mulf %63, %64 : vector<4x256xf32>
    %cst_55 = arith.constant dense<0.000000e+00> : vector<4x256xf32>
    %66 = tpu.matmul %42, %65, %cst_55 {dimension_numbers = #tpu.dot_dimension_numbers<[1], [0], [0], [1], [0, 0, 1, 1], [], []>} : vector<4x4xf32>, vector<4x256xf32>, vector<4x256xf32> -> vector<4x256xf32>
    %67 = arith.addf %58, %66 : vector<4x256xf32>
    %c1_56 = arith.constant 1 : index
    %c0_57 = arith.constant 0 : index
    %c0_58 = arith.constant 0 : index
    %68 = vector.load %arg6[%c1_56, %c0_57, %c0_58] : memref<2x4x256xf32, #tpu.memory_space<vmem>>, vector<1x4x256xf32>
    %69 = vector.shape_cast %68 : vector<1x4x256xf32> to vector<4x256xf32>
    %70 = vector.shape_cast %67 : vector<4x256xf32> to vector<1x4x256xf32>
    tpu.vector_store %arg6[%c1_56, %c0_57, %c0_58], %70 {strides = array<i32>} : memref<2x4x256xf32, #tpu.memory_space<vmem>>, vector<1x4x256xf32>,
    return
  }
  func.func @transform_0(%arg0: i32) -> (i32, i32) {
    %c0_i32 = arith.constant 0 : i32
    %c0_i32_0 = arith.constant 0 : i32
    %c0_i32_1 = arith.constant 0 : i32
    return %c0_i32, %c0_i32_0 : i32, i32
  }
  func.func @transform_1(%arg0: i32) -> (i32, i32) {
    %c0_i32 = arith.constant 0 : i32
    %c0_i32_0 = arith.constant 0 : i32
    %c0_i32_1 = arith.constant 0 : i32
    return %c0_i32, %c0_i32_0 : i32, i32
  }
  func.func @transform_2(%arg0: i32) -> (i32, i32, i32) {
    %c0_i32 = arith.constant 0 : i32
    %c0_i32_0 = arith.constant 0 : i32
    %c0_i32_1 = arith.constant 0 : i32
    %c0_i32_2 = arith.constant 0 : i32
    return %c0_i32, %c0_i32_0, %c0_i32_1 : i32, i32, i32
  }
  func.func @transform_3(%arg0: i32) -> (i32, i32, i32) {
    %c0_i32 = arith.constant 0 : i32
    %c0_i32_0 = arith.constant 0 : i32
    %c0_i32_1 = arith.constant 0 : i32
    %c0_i32_2 = arith.constant 0 : i32
    return %c0_i32, %c0_i32_0, %c0_i32_1 : i32, i32, i32
  }
  func.func @transform_4(%arg0: i32) -> (i32, i32, i32) {
    %c0_i32 = arith.constant 0 : i32
    %c0_i32_0 = arith.constant 0 : i32
    %c0_i32_1 = arith.constant 0 : i32
    %c0_i32_2 = arith.constant 0 : i32
    return %c0_i32, %c0_i32_0, %c0_i32_1 : i32, i32, i32
  }
  func.func @transform_5(%arg0: i32) -> (i32, i32, i32) {
    %c0_i32 = arith.constant 0 : i32
    %c0_i32_0 = arith.constant 0 : i32
    %c0_i32_1 = arith.constant 0 : i32
    %c0_i32_2 = arith.constant 0 : i32
    return %c0_i32, %c0_i32_0, %c0_i32_1 : i32, i32, i32
  }
}

</mosaic_0001>

<bundles_post_ra>
// kernel: posterior_sampling.1
= control target key start
LH: loop header
LB: loop body
LE: loop exit
PB: predicated region body
PF: predicated region fallthrough
CT: control target
= control target key end

     0   :  { %vm28_vm0 = vcmask 1043456   ;;  %v466_v2 = vmov 0.0   ;;  %vm24_vm1 = vcmask 31744   ;;  %s467_s8 = smov 1e-20   ;;  %s555_s2 = inlined_call_operand.vmem [shape: f32[2,4,256], index: 2, kind: input, shape index: {}]   ;;  %s556_s0 = inlined_call_operand.vmem [shape: f32[4,4], index: 0, kind: input, shape index: {}]   ;;  %s557_s4 = inlined_call_operand.vmem [shape: f32[2,4,256], index: 4, kind: input, shape index: {}]   ;;  %s558_s3 = inlined_call_operand.vmem [shape: f32[2,4,256], index: 3, kind: input, shape index: {}]   ;;  %s559_s1 = inlined_call_operand.vmem [shape: f32[4,4], index: 1, kind: input, shape index: {}]   ;;  %s560_s5 = inlined_call_operand.vmem [shape: f32[2,4,256], index: 5, kind: output, shape index: {}]  }
   0x1   :  { %v21_v0 = vld [vmem:[%s555_s2] sm:$0xff]  ;;  %v437_v1 = vld [vmem:[%s555_s2 + $0x8] sm:$0xff]  ;;  %97 = vmatprep.mubr.f32.mxu0 %v466_v2  ;;  %206 = vmatprep.mubr.f32.mxu1 %v466_v2 }
   0x2   :  { %v23_v3 = vcombine.high %v21_v0, %v21_v0  ;;  %v134_v4 = vcombine.high %v437_v1, %v437_v1  ;;  %v20_v5 = vld [vmem:[%s556_s0] sm:$0xf]  ;;  %v443_v9 = vld [vmem:[%s557_s4 + $0x8] sm:$0xff] }
   0x3   :  { %v130_v6 = vld [vmem:[%s556_s0] sm:$0xf]  ;;  %v449_v13 = vld [vmem:[%s558_s3 + $0x8] sm:$0xff]  ;;  %v345_v18 = vmul.f32 %v443_v9, %v443_v9 }
   0x4   :  { %434 = vmatprep.subr.msk.mxu0 %vm28_vm0, %v23_v3  ;;  %438 = vmatprep.subr.msk.mxu1 %vm28_vm0, %v134_v4  ;;  %v111_v10 = vld [vmem:[%s557_s4] sm:$0xff] }
   0x5   :  { %435 = vmatpush1.msk.msra.mxu0 %vm28_vm0, %v21_v0  ;;  %439 = vmatpush1.msk.msra.mxu1 %vm28_vm0, %v437_v1  ;;  %v109_v12 = vld [vmem:[%s558_s3] sm:$0xff]  ;;  %v253_v17 = vmul.f32 %v111_v10, %v111_v10 }
   0x6   :  { %436 = vmatmul.mubr.msk.f32.vlgmr.msra.gmra.mxu0 %vm24_vm1, %v20_v5  ;;  %440 = vmatmul.mubr.msk.f32.vlgmr.msra.gmra.mxu1 %vm24_vm1, %v130_v6  ;;  %v246_v53 = vld [vmem:[%s559_s1] sm:$0xf] }
   0x7   :  { %328 = vmatprep.mubr.f32.mxu0 %v466_v2  ;;  %417 = vmatprep.mubr.f32.mxu1 %v466_v2 }
  0xc6   :  { %v99_v7 = vpop.f32.mrf.mxu0  ;;  %v208_v8 = vpop.f32.mrf.mxu1 }
  0xc8   :  { %v101_v11 = vpop.f32.mrf.mxu0  ;;  %v210_v14 = vpop.f32.mrf.mxu1 }
  0xc9   :  { %v528_v15 = vcombine.low %v99_v7, %v101_v11  ;;  %v530_v16 = vcombine.low %v208_v8, %v210_v14 }
  0xcb   :  { %v110_v19 = vsub.f32 %v109_v12, %v528_v15  ;;  %v221_v20 = vsub.f32 %v449_v13, %v530_v16 }
  0xcd   :  { %v224_v21 = vmul.f32 %v443_v9, %v221_v20  ;;  %v112_v22 = vmul.f32 %v111_v10, %v110_v19  ;;  %v254_v23 = vmul.f32 %v253_v17, %v110_v19  ;;  %v346_v24 = vmul.f32 %v345_v18, %v221_v20 }
  0xcf   :  { %v113_v25 = vmul.f32 %v112_v22, %v112_v22  ;;  %v256_v26 = vcombine.high %v254_v23, %v254_v23  ;;  %v348_v27 = vcombine.high %v346_v24, %v346_v24  ;;  %v225_v28 = vmul.f32 %v224_v21, %v224_v21 }
  0xd1   :  { %v115_v29 = vcombine.high %v113_v25, %v113_v25  ;;  %444 = vmatprep.subr.msk.mxu0 %vm28_vm0, %v256_v26  ;;  %450 = vmatprep.subr.msk.mxu1 %vm28_vm0, %v348_v27  ;;  %v227_v30 = vcombine.high %v225_v28, %v225_v28  ;;  %v117_v31 = vsel %vm28_vm0, %v113_v25, 0.0  ;;  %v229_v34 = vsel %vm28_vm0, %v225_v28, 0.0 }
  0xd2   :  { %451 = vmatpush1.msk.msra.mxu1 %vm28_vm0, %v346_v24  ;;  %445 = vmatpush1.msk.msra.mxu0 %vm28_vm0, %v254_v23 }
  0xd3   :  { %v118_v32 = vsel %vm28_vm0, %v115_v29, 0.0  ;;  %v230_v35 = vsel %vm28_vm0, %v227_v30, 0.0 }
  0xd4   :  { %v119_v33 = vadd.f32 %v118_v32, %v117_v31  ;;  %v231_v36 = vadd.f32 %v230_v35, %v229_v34 }
  0xd6   :  { %120 = vadd.xlane.f32.xlu0 %v119_v33 }
  0xda   :  { %232 = vadd.xlane.f32.xlu0 %v231_v36 }
 0x15f   :  { %v121_v37 = vpop.xlane.xlu0 %120 }
 0x160   :  { %v122_v38 = vrot.slane %v121_v37, 4 }
 0x162   :  { %v123_v39 = vadd.f32 %v122_v38, %v121_v37 }
 0x163   :  { %v233_v40 = vpop.xlane.xlu0 %232 }
 0x164   :  { %v124_v41 = vrot.slane %v123_v39, 2  ;;  %v234_v42 = vrot.slane %v233_v40, 4 }
 0x166   :  { %v235_v43 = vadd.f32 %v234_v42, %v233_v40  ;;  %v125_v44 = vadd.f32 %v124_v41, %v123_v39 }
 0x168   :  { %v236_v45 = vrot.slane %v235_v43, 2  ;;  %v126_v46 = vrot.slane %v125_v44, 1 }
 0x16a   :  { %v237_v47 = vadd.f32 %v236_v45, %v235_v43  ;;  %v127_v48 = vadd.f32 %v126_v46, %v125_v44 }
 0x16c   :  { %454 = vpush %v127_v48  ;;  %v238_v49 = vrot.slane %v237_v47, 1 }
 0x16e   :  { %v239_v50 = vadd.f32 %v238_v49, %v237_v47 }
 0x170   :  { %456 = vpush %v239_v50 }
 0x19d   :  { %s455_s3 = spop %454 }
 0x1a1   :  { %s457_s4 = spop %456 }
 0x1a2   :  { %s241_s7 = sadd.f32 %s457_s4, %s455_s3 }
 0x1a4   :  { %s242_s9 = smax.f32 %s467_s8, %s241_s7 }
 0x1a5   :  { %v243_v51 = vstv %s242_s9 }
 0x1a6   :  { %464 = vrsqrt.f32 %v243_v51 }
 0x1b3   :  { %v465_v52 = vpop.eup %464 }
 0x1b4   :  { %458 = vpush %v465_v52 }
 0x1e5   :  { %s459_s12 = spop %458 }
 0x1e6   :  { %v247_v54 = vstv %s459_s12 }
 0x1e7   :  { %v248_v55 = vmul.f32 %v247_v54, %v246_v53 }
 0x1e9   :  { %446 = vmatmul.mubr.msk.f32.vlgmr.msra.gmra.mxu0 %vm24_vm1, %v248_v55  ;;  %452 = vmatmul.mubr.msk.f32.vlgmr.msra.gmra.mxu1 %vm24_vm1, %v248_v55 }
 0x2a9   :  { %v330_v56 = vpop.f32.mrf.mxu0  ;;  %v419_v57 = vpop.f32.mrf.mxu1 }
 0x2ab   :  { %v332_v58 = vpop.f32.mrf.mxu0  ;;  %v421_v59 = vpop.f32.mrf.mxu1 }
 0x2ac   :  { %v337_v60 = vcombine.low %v330_v56, %v332_v58  ;;  %v426_v61 = vcombine.low %v419_v57, %v421_v59 }
 0x2ae   :  { %v339_v62 = vadd.f32 %v337_v60, %v528_v15  ;;  %v428_v63 = vadd.f32 %v426_v61, %v530_v16 }
 0x2b0   :  { %340 = vst [vmem:[%s560_s5] sm:$0xff] %v339_v62  ;;  %453 = vst [vmem:[%s560_s5 + $0x8] sm:$0xff] %v428_v63 }

</bundles_post_ra>
